<compile_context>
chip_gen: v7x
topology: tpu7x:2x2x1
jax: 0.10.0
libtpu: 0.0.40
codegen_flags: <defaults>
</compile_context>

<pallas_src>
import math
from functools import partial

import jax
import jax.numpy as jnp
from jax.experimental import pallas as pl
from jax.experimental.pallas import tpu as pltpu

LANE = 128
_TB_CAP = 16384  # lanes per grid step; keeps blocks+temps < 16 MiB scoped VMEM


# --------------------------------------------------------------------------
# Kernel
# --------------------------------------------------------------------------
def _euler_update(sc, zeta_row, sim_ref, action_ref, noise_ref, out_ref,
                  *, N, M, dt):
    """One Euler step on a lane-major (features, TB) tile.

    sim_ref rows:   [0]                w_t
                    [1 .. 1+N)         s_t
                    [1+N .. 1+N+M)     zeta slots of the state
                    [1+N+M .. 1+N+2M)  B_t
    noise_ref rows: [0 .. M)  dBt ~ N(0, dt)   (forward's torch.normal)
                    [M .. 2M) dB2 ~ N(0, dt)   (B_t_simulator's torch.normal)
    sc (SMEM):      [0..N) mu | [N..N+N*M) sigma | [N+N*M] bt | [+1..+1+M) zeta
    out_ref rows mirror sim_ref (new state followed by new B_t).
    """
    f32 = jnp.float32
    dBt = [noise_ref[m:m + 1, :].astype(f32) for m in range(M)]  # M x (1, TB)

    # dwt = bt*dt + sum_n action[n]*dst[n] + sum_m zeta[m]*dBt[m]
    dwt = sc[N + N * M] * dt
    for n in range(N):
        # dst[n] = mu[n]*dt + sum_m sigma[n,m]*dBt[m]  (unrolled scalar FMAs;
        # a padded 4x4 MXU contraction would be pure waste)
        dst_n = sc[n] * dt + sc[N + n * M] * dBt[0]
        for m in range(1, M):
            dst_n = dst_n + sc[N + n * M + m] * dBt[m]
        # Store s_new row as soon as produced (no concat; frees registers).
        out_ref[1 + n:2 + n, :] = (
            sim_ref[1 + n:2 + n, :].astype(f32) + dst_n).astype(out_ref.dtype)
        dwt = dwt + action_ref[n:n + 1, :].astype(f32) * dst_n
    for m in range(M):
        dwt = dwt + zeta_row(m) * dBt[m]
    out_ref[0:1, :] = (sim_ref[0:1, :].astype(f32) + dwt).astype(out_ref.dtype)

    # Torch order: zeta_simulator uses the *pre-update* B_t, then
    # B_t_simulator adds dB2.  'brownian' => zeta_new = eye(M) @ B_t = B_t.
    B_t = sim_ref[1 + N + M:1 + N + 2 * M, :].astype(f32)          # (M, TB)
    out_ref[1 + N:1 + N + M, :] = B_t.astype(out_ref.dtype)
    out_ref[1 + N + M:1 + N + 2 * M, :] = (
        B_t + noise_ref[M:2 * M, :].astype(f32)).astype(out_ref.dtype)


def _kernel_shared_zeta(sc_ref, sim_ref, action_ref, noise_ref, out_ref,
                        *, num_stock, num_brownian, dt):
    N, M = num_stock, num_brownian
    zoff = N + N * M + 1
    _euler_update(sc_ref, lambda m: sc_ref[zoff + m],
                  sim_ref, action_ref, noise_ref, out_ref, N=N, M=M, dt=dt)


def _kernel_state_zeta(sc_ref, sim_ref, action_ref, noise_ref, out_ref,
                       *, num_stock, num_brownian, dt):
    # Chained 'brownian' steps: zeta equals the zeta rows already inside the
    # sim slab -> zero extra DMA.
    N, M = num_stock, num_brownian
    _euler_update(sc_ref,
                  lambda m: sim_ref[1 + N + m:2 + N + m, :].astype(jnp.float32),
                  sim_ref, action_ref, noise_ref, out_ref, N=N, M=M, dt=dt)


def _kernel_batched_zeta(sc_ref, sim_ref, action_ref, noise_ref, zeta_ref,
                         out_ref, *, num_stock, num_brownian, dt):
    N, M = num_stock, num_brownian
    _euler_update(sc_ref,
                  lambda m: zeta_ref[m:m + 1, :].astype(jnp.float32),
                  sim_ref, action_ref, noise_ref, out_ref, N=N, M=M, dt=dt)


# --------------------------------------------------------------------------
# Wrapper
# --------------------------------------------------------------------------
def _choose_tb(B):
    if B <= LANE:
        return B                       # single block == full array
    # >= 2 blocks whenever possible so the "parallel" grid axis can be split
    # across the two TensorCores on v7x; multiple of 128; capped for VMEM.
    tb = min(_TB_CAP, pl.cdiv(B, 2))
    return max(LANE, (tb // LANE) * LANE)


def market_step(sim, action_T, noise, param, *,
                num_stock, num_brownian, dt=1.0 / 252.0):
    """One Euler step of Market.forward in lane-major layout.

    sim:      (1+N+2M, B)  rows = [w; s(N); zeta(M); B_t(M)]  (persistent slab)
    action_T: (N, B)       action rows (torch action (B,1,N) transposed once)
    noise:    (2M, B)      rows = [dBt(M); dB2(M)], each ~ N(0, dt)
    param:    {'geo_param': (mu, sigma), 'zeta': ..., 'bt': bt}
              zeta: (M,)/(M,1) shared, (M,B) or (B,M,1) per-sample, or None to
              read it from the slab's own zeta rows (chained fast path).
    Returns (sim_new, new_param); sim_new feeds the next step directly.
    """
    N, M = num_stock, num_brownian
    R = 1 + N + 2 * M
    assert sim.shape[0] == R, f"sim must have {R} feature rows"
    B = sim.shape[1]

    mu, sigma = param['geo_param']
    zeta = param.get('zeta')
    bt = param['bt']

    mu_a = jnp.asarray(mu, jnp.float32)
    sigma_a = jnp.asarray(sigma, jnp.float32)
    if mu_a.ndim == 3:                 # batched views: rows identical (TODO above)
        mu_a = mu_a[0]
    if sigma_a.ndim == 3:
        sigma_a = sigma_a[0]
    mu_flat = mu_a.reshape(-1)                                  # (N,)
    sigma_flat = sigma_a.reshape(-1)                            # (N*M,)
    bt_arr = jnp.asarray(bt, jnp.float32).reshape((1,))

    # Resolve the zeta path: SMEM scalars / slab rows / per-sample VMEM rows.
    zeta_rows = None
    if zeta is None:
        mode = 'state'
        zeta_smem = jnp.zeros((M,), jnp.float32)
    else:
        zeta_a = jnp.asarray(zeta)
        if zeta_a.ndim == 1 or (zeta_a.ndim == 2 and zeta_a.shape[1] == 1):
            mode = 'shared'
            zeta_smem = zeta_a.astype(jnp.float32).reshape(-1)   # (M,)
        else:
            mode = 'per_sample'
            zeta_smem = jnp.zeros((M,), jnp.float32)
            if zeta_a.ndim == 3:        # torch layout (B, M, 1): one transpose
                zeta_rows = zeta_a.reshape(B, M).T
            else:                       # already lane-major (M, B)
                zeta_rows = zeta_a

    # One packed SMEM scalar vector: [mu | sigma | bt | zeta_shared].
    scalars = jnp.concatenate([mu_flat, sigma_flat, bt_arr, zeta_smem])

    TB = _choose_tb(B)
    grid = (pl.cdiv(B, TB),)
    lane = lambda d: pl.BlockSpec((d, TB), lambda i: (0, i))
    smem_spec = pl.BlockSpec(memory_space=pltpu.MemorySpace.SMEM)

    in_specs = [smem_spec, lane(R), lane(N), lane(2 * M)]
    args = [scalars, sim, action_T, noise]
    if mode == 'per_sample':
        kernel = partial(_kernel_batched_zeta,
                         num_stock=N, num_brownian=M, dt=float(dt))
        in_specs.append(lane(M))
        args.append(zeta_rows)
    elif mode == 'state':
        kernel = partial(_kernel_state_zeta,
                         num_stock=N, num_brownian=M, dt=float(dt))
    else:
        kernel = partial(_kernel_shared_zeta,
                         num_stock=N, num_brownian=M, dt=float(dt))

    sim_new = pl.pallas_call(
        kernel,
        out_shape=jax.ShapeDtypeStruct((R, B), sim.dtype),
        grid=grid,
        in_specs=in_specs,
        out_specs=lane(R),
        compiler_params=pltpu.CompilerParams(
            dimension_semantics=("parallel",),
            vmem_limit_bytes=32 * 1024 * 1024),
    )(*args)

    # zeta_new rows live inside the slab (same dtype as new_state by
    # construction).  geo_param passed through un-expanded (matches torch's
    # non-copying .expand() for shared parameters).
    zeta_new = sim_new[1 + N:1 + N + M, :]                       # (M, B)
    new_param = {'geo_param': (mu, sigma), 'zeta': zeta_new, 'bt': bt}
    return sim_new, new_param


# --------------------------------------------------------------------------
# Pure-JAX reference mirroring the torch forward (batch-major, test only)
# --------------------------------------------------------------------------
def market_reference(state, action, param, B_t, dBt, dB2,
                     *, num_stock, num_brownian, dt):
    B = state.shape[0]
    N, M = num_stock, num_brownian
    mu, sigma = param['geo_param']
    zeta = param['zeta']
    bt = param['bt']
    mu_b = jnp.broadcast_to(mu.reshape(N, 1)[None], (B, N, 1)) if mu.ndim == 2 else mu
    sigma_b = jnp.broadcast_to(sigma[None], (B, N, M)) if sigma.ndim == 2 else sigma
    zeta_b = (jnp.broadcast_to(zeta.reshape(M, 1)[None], (B, M, 1))
              if zeta.ndim != 3 else zeta)
    w_t = state[:, 0:1]
    s_t = state[:, 1:1 + N]
    dst = mu_b * dt + jnp.matmul(sigma_b, dBt)                       # (B, N, 1)
    s_new = s_t + dst[..., 0]
    dwt = (jnp.matmul(action, dst)
           + jnp.matmul(jnp.transpose(zeta_b, (0, 2, 1)), dBt)
           + bt * dt)                                                # (B, 1, 1)
    w_new = w_t + dwt[:, :, 0]
    zeta_new = B_t                                                   # pre-update
    Bt_new = B_t + dB2
    new_state = jnp.concatenate([w_new, s_new, zeta_new[..., 0]], axis=1)
    return new_state, zeta_new, Bt_new


# --------------------------------------------------------------------------
if __name__ == "__main__":
    B, N, M = 256, 4, 4
    dt = 1.0 / 252.0
    dshape = 1 + N + M
    R = dshape + M

    key = jax.random.PRNGKey(0)
    keys = jax.random.split(key, 10)

    # Shared market parameters (as the module's param dict).
    mu = jax.random.normal(keys[0], (N, 1), jnp.float32) * 0.05
    sigma = jax.random.normal(keys[1], (N, M), jnp.float32) * 0.2
    zeta0 = jax.random.normal(keys[2], (M, 1), jnp.float32) * 0.1
    bt = jnp.float32(0.03)
    param0 = {'geo_param': (mu, sigma), 'zeta': zeta0, 'bt': bt}

    # Persistent lane-major sim slab: [w; s; zeta; B_t] of shape (R, B).
    w0 = jax.random.normal(keys[3], (1, B), jnp.float32)
    s0 = jax.random.normal(keys[4], (N, B), jnp.float32)
    Bt0 = jax.random.normal(keys[5], (M, B), jnp.float32) * math.sqrt(dt)
    sim0 = jnp.concatenate([w0, s0, jnp.broadcast_to(zeta0, (M, B)), Bt0], axis=0)

    # Actions from the policy (torch layout), transposed once per step.
    action1 = jax.random.normal(keys[6], (B, 1, N), jnp.float32)
    action2 = jax.random.normal(keys[7], (B, 1, N), jnp.float32)
    action1_T = action1.reshape(B, N).T
    action2_T = action2.reshape(B, N).T

    # Brownian increments drawn directly in the stacked lane-major layout:
    # rows [0:M) = dBt (forward), rows [M:2M) = dB2 (B_t_simulator).
    noise1 = jax.random.normal(keys[8], (2 * M, B), jnp.float32) * math.sqrt(dt)
    noise2 = jax.random.normal(keys[9], (2 * M, B), jnp.float32) * math.sqrt(dt)

    # Step 1: shared zeta (SMEM scalars).
    sim1, param1 = market_step(sim0, action1_T, noise1, param0,
                               num_stock=N, num_brownian=M, dt=dt)
    # Step 2a: per-sample zeta from the previous step (VMEM (M, B) rows).
    sim2a, _ = market_step(sim1, action2_T, noise2, param1,
                           num_stock=N, num_brownian=M, dt=dt)
    # Step 2b: zero-copy chained path — zeta read from the slab's own rows.
    sim2b, _ = market_step(sim1, action2_T, noise2, {**param1, 'zeta': None},
                           num_stock=N, num_brownian=M, dt=dt)
    jax.block_until_ready((sim1, sim2a, sim2b))

    assert sim1.shape == (R, B) and sim2a.shape == (R, B)

    # ---- validation against the batch-major reference (test-only views) ----
    def bm(sim_slab):
        return sim_slab[:dshape].T, sim_slab[dshape:].T[:, :, None]

    state0_bm, Bt0_bm = bm(sim0)
    dBt1 = noise1[:M].T[:, :, None]
    dB21 = noise1[M:].T[:, :, None]
    ref1_state, ref1_zeta, ref1_Bt = market_reference(
        state0_bm, action1, param0, Bt0_bm, dBt1, dB21,
        num_stock=N, num_brownian=M, dt=dt)

    k_state1, k_Bt1 = bm(sim1)
    assert jnp.allclose(k_state1, ref1_state, rtol=1e-5, atol=1e-5)
    assert jnp.allclose(k_Bt1, ref1_Bt, rtol=1e-5, atol=1e-5)
    assert jnp.allclose(param1['zeta'].T[:, :, None], ref1_zeta, rtol=1e-5, atol=1e-5)

    param1_ref = {'geo_param': (mu, sigma), 'zeta': ref1_zeta, 'bt': bt}
    dBt2 = noise2[:M].T[:, :, None]
    dB22 = noise2[M:].T[:, :, None]
    ref2_state, ref2_zeta, ref2_Bt = market_reference(
        ref1_state, action2, param1_ref, ref1_Bt, dBt2, dB22,
        num_stock=N, num_brownian=M, dt=dt)

    k_state2, k_Bt2 = bm(sim2a)
    assert jnp.allclose(k_state2, ref2_state, rtol=1e-5, atol=1e-5)
    assert jnp.allclose(k_Bt2, ref2_Bt, rtol=1e-5, atol=1e-5)
    # Both per-sample-zeta paths must agree.
    assert jnp.allclose(sim2a, sim2b, rtol=1e-6, atol=1e-6)

    print("KERNEL_OK")
</pallas_src>

<mosaic_0001>
module attributes {stable_mosaic.version = 11 : i64} {
  func.func @_kernel_shared_zeta(%arg0: i32, %arg1: memref<25xf32, #tpu.memory_space<smem>>, %arg2: memref<13x128xf32, #tpu.memory_space<vmem>>, %arg3: memref<4x128xf32, #tpu.memory_space<vmem>>, %arg4: memref<8x128xf32, #tpu.memory_space<vmem>>, %arg5: memref<13x128xf32, #tpu.memory_space<vmem>>) attributes {dimension_semantics = [#tpu.dimension_semantics<parallel>], iteration_bounds = array<i64: 2>, scalar_prefetch = 0 : i64, scratch_operands = 0 : i64, tpu.core_type = #tpu.core_type<tc>, window_params = [{transform_indices = @transform_0, window_bounds = array<i64: 25>}, {transform_indices = @transform_1, window_bounds = array<i64: 13, 128>}, {transform_indices = @transform_2, window_bounds = array<i64: 4, 128>}, {transform_indices = @transform_3, window_bounds = array<i64: 8, 128>}, {transform_indices = @transform_4, window_bounds = array<i64: 13, 128>}]} {
    %c0 = arith.constant 0 : index
    %c0_0 = arith.constant 0 : index
    %0 = vector.load %arg4[%c0, %c0_0] : memref<8x128xf32, #tpu.memory_space<vmem>>, vector<1x128xf32>
    %c1 = arith.constant 1 : index
    %c0_1 = arith.constant 0 : index
    %1 = vector.load %arg4[%c1, %c0_1] : memref<8x128xf32, #tpu.memory_space<vmem>>, vector<1x128xf32>
    %c2 = arith.constant 2 : index
    %c0_2 = arith.constant 0 : index
    %2 = vector.load %arg4[%c2, %c0_2] : memref<8x128xf32, #tpu.memory_space<vmem>>, vector<1x128xf32>
    %c3 = arith.constant 3 : index
    %c0_3 = arith.constant 0 : index
    %3 = vector.load %arg4[%c3, %c0_3] : memref<8x128xf32, #tpu.memory_space<vmem>>, vector<1x128xf32>
    %c20 = arith.constant 20 : index
    %4 = memref.load %arg1[%c20] : memref<25xf32, #tpu.memory_space<smem>>
    %cst = arith.constant 0.0039682542 : f32
    %5 = arith.mulf %4, %cst : f32
    %c0_4 = arith.constant 0 : index
    %6 = memref.load %arg1[%c0_4] : memref<25xf32, #tpu.memory_space<smem>>
    %cst_5 = arith.constant 0.0039682542 : f32
    %7 = arith.mulf %6, %cst_5 : f32
    %c4 = arith.constant 4 : index
    %8 = memref.load %arg1[%c4] : memref<25xf32, #tpu.memory_space<smem>>
    %9 = vector.broadcast %8 : f32 to vector<1x128xf32>
    %10 = arith.mulf %9, %0 : vector<1x128xf32>
    %11 = vector.broadcast %7 : f32 to vector<1x128xf32>
    %12 = arith.addf %11, %10 : vector<1x128xf32>
    %c5 = arith.constant 5 : index
    %13 = memref.load %arg1[%c5] : memref<25xf32, #tpu.memory_space<smem>>
    %14 = vector.broadcast %13 : f32 to vector<1x128xf32>
    %15 = arith.mulf %14, %1 : vector<1x128xf32>
    %16 = arith.addf %12, %15 : vector<1x128xf32>
    %c6 = arith.constant 6 : index
    %17 = memref.load %arg1[%c6] : memref<25xf32, #tpu.memory_space<smem>>
    %18 = vector.broadcast %17 : f32 to vector<1x128xf32>
    %19 = arith.mulf %18, %2 : vector<1x128xf32>
    %20 = arith.addf %16, %19 : vector<1x128xf32>
    %c7 = arith.constant 7 : index
    %21 = memref.load %arg1[%c7] : memref<25xf32, #tpu.memory_space<smem>>
    %22 = vector.broadcast %21 : f32 to vector<1x128xf32>
    %23 = arith.mulf %22, %3 : vector<1x128xf32>
    %24 = arith.addf %20, %23 : vector<1x128xf32>
    %c1_6 = arith.constant 1 : index
    %c0_7 = arith.constant 0 : index
    %25 = vector.load %arg2[%c1_6, %c0_7] : memref<13x128xf32, #tpu.memory_space<vmem>>, vector<1x128xf32>
    %26 = arith.addf %25, %24 : vector<1x128xf32>
    %c1_8 = arith.constant 1 : index
    %c0_9 = arith.constant 0 : index
    %27 = vector.load %arg5[%c1_8, %c0_9] : memref<13x128xf32, #tpu.memory_space<vmem>>, vector<1x128xf32>
    tpu.vector_store %arg5[%c1_8, %c0_9], %26 {strides = array<i32>} : memref<13x128xf32, #tpu.memory_space<vmem>>, vector<1x128xf32>,
    %c0_10 = arith.constant 0 : index
    %c0_11 = arith.constant 0 : index
    %28 = vector.load %arg3[%c0_10, %c0_11] : memref<4x128xf32, #tpu.memory_space<vmem>>, vector<1x128xf32>
    %29 = arith.mulf %28, %24 : vector<1x128xf32>
    %30 = vector.broadcast %5 : f32 to vector<1x128xf32>
    %31 = arith.addf %30, %29 : vector<1x128xf32>
    %c1_12 = arith.constant 1 : index
    %32 = memref.load %arg1[%c1_12] : memref<25xf32, #tpu.memory_space<smem>>
    %cst_13 = arith.constant 0.0039682542 : f32
    %33 = arith.mulf %32, %cst_13 : f32
    %c8 = arith.constant 8 : index
    %34 = memref.load %arg1[%c8] : memref<25xf32, #tpu.memory_space<smem>>
    %35 = vector.broadcast %34 : f32 to vector<1x128xf32>
    %36 = arith.mulf %35, %0 : vector<1x128xf32>
    %37 = vector.broadcast %33 : f32 to vector<1x128xf32>
    %38 = arith.addf %37, %36 : vector<1x128xf32>
    %c9 = arith.constant 9 : index
    %39 = memref.load %arg1[%c9] : memref<25xf32, #tpu.memory_space<smem>>
    %40 = vector.broadcast %39 : f32 to vector<1x128xf32>
    %41 = arith.mulf %40, %1 : vector<1x128xf32>
    %42 = arith.addf %38, %41 : vector<1x128xf32>
    %c10 = arith.constant 10 : index
    %43 = memref.load %arg1[%c10] : memref<25xf32, #tpu.memory_space<smem>>
    %44 = vector.broadcast %43 : f32 to vector<1x128xf32>
    %45 = arith.mulf %44, %2 : vector<1x128xf32>
    %46 = arith.addf %42, %45 : vector<1x128xf32>
    %c11 = arith.constant 11 : index
    %47 = memref.load %arg1[%c11] : memref<25xf32, #tpu.memory_space<smem>>
    %48 = vector.broadcast %47 : f32 to vector<1x128xf32>
    %49 = arith.mulf %48, %3 : vector<1x128xf32>
    %50 = arith.addf %46, %49 : vector<1x128xf32>
    %c2_14 = arith.constant 2 : index
    %c0_15 = arith.constant 0 : index
    %51 = vector.load %arg2[%c2_14, %c0_15] : memref<13x128xf32, #tpu.memory_space<vmem>>, vector<1x128xf32>
    %52 = arith.addf %51, %50 : vector<1x128xf32>
    %c2_16 = arith.constant 2 : index
    %c0_17 = arith.constant 0 : index
    %53 = vector.load %arg5[%c2_16, %c0_17] : memref<13x128xf32, #tpu.memory_space<vmem>>, vector<1x128xf32>
    tpu.vector_store %arg5[%c2_16, %c0_17], %52 {strides = array<i32>} : memref<13x128xf32, #tpu.memory_space<vmem>>, vector<1x128xf32>,
    %c1_18 = arith.constant 1 : index
    %c0_19 = arith.constant 0 : index
    %54 = vector.load %arg3[%c1_18, %c0_19] : memref<4x128xf32, #tpu.memory_space<vmem>>, vector<1x128xf32>
    %55 = arith.mulf %54, %50 : vector<1x128xf32>
    %56 = arith.addf %31, %55 : vector<1x128xf32>
    %c2_20 = arith.constant 2 : index
    %57 = memref.load %arg1[%c2_20] : memref<25xf32, #tpu.memory_space<smem>>
    %cst_21 = arith.constant 0.0039682542 : f32
    %58 = arith.mulf %57, %cst_21 : f32
    %c12 = arith.constant 12 : index
    %59 = memref.load %arg1[%c12] : memref<25xf32, #tpu.memory_space<smem>>
    %60 = vector.broadcast %59 : f32 to vector<1x128xf32>
    %61 = arith.mulf %60, %0 : vector<1x128xf32>
    %62 = vector.broadcast %58 : f32 to vector<1x128xf32>
    %63 = arith.addf %62, %61 : vector<1x128xf32>
    %c13 = arith.constant 13 : index
    %64 = memref.load %arg1[%c13] : memref<25xf32, #tpu.memory_space<smem>>
    %65 = vector.broadcast %64 : f32 to vector<1x128xf32>
    %66 = arith.mulf %65, %1 : vector<1x128xf32>
    %67 = arith.addf %63, %66 : vector<1x128xf32>
    %c14 = arith.constant 14 : index
    %68 = memref.load %arg1[%c14] : memref<25xf32, #tpu.memory_space<smem>>
    %69 = vector.broadcast %68 : f32 to vector<1x128xf32>
    %70 = arith.mulf %69, %2 : vector<1x128xf32>
    %71 = arith.addf %67, %70 : vector<1x128xf32>
    %c15 = arith.constant 15 : index
    %72 = memref.load %arg1[%c15] : memref<25xf32, #tpu.memory_space<smem>>
    %73 = vector.broadcast %72 : f32 to vector<1x128xf32>
    %74 = arith.mulf %73, %3 : vector<1x128xf32>
    %75 = arith.addf %71, %74 : vector<1x128xf32>
    %c3_22 = arith.constant 3 : index
    %c0_23 = arith.constant 0 : index
    %76 = vector.load %arg2[%c3_22, %c0_23] : memref<13x128xf32, #tpu.memory_space<vmem>>, vector<1x128xf32>
    %77 = arith.addf %76, %75 : vector<1x128xf32>
    %c3_24 = arith.constant 3 : index
    %c0_25 = arith.constant 0 : index
    %78 = vector.load %arg5[%c3_24, %c0_25] : memref<13x128xf32, #tpu.memory_space<vmem>>, vector<1x128xf32>
    tpu.vector_store %arg5[%c3_24, %c0_25], %77 {strides = array<i32>} : memref<13x128xf32, #tpu.memory_space<vmem>>, vector<1x128xf32>,
    %c2_26 = arith.constant 2 : index
    %c0_27 = arith.constant 0 : index
    %79 = vector.load %arg3[%c2_26, %c0_27] : memref<4x128xf32, #tpu.memory_space<vmem>>, vector<1x128xf32>
    %80 = arith.mulf %79, %75 : vector<1x128xf32>
    %81 = arith.addf %56, %80 : vector<1x128xf32>
    %c3_28 = arith.constant 3 : index
    %82 = memref.load %arg1[%c3_28] : memref<25xf32, #tpu.memory_space<smem>>
    %cst_29 = arith.constant 0.0039682542 : f32
    %83 = arith.mulf %82, %cst_29 : f32
    %c16 = arith.constant 16 : index
    %84 = memref.load %arg1[%c16] : memref<25xf32, #tpu.memory_space<smem>>
    %85 = vector.broadcast %84 : f32 to vector<1x128xf32>
    %86 = arith.mulf %85, %0 : vector<1x128xf32>
    %87 = vector.broadcast %83 : f32 to vector<1x128xf32>
    %88 = arith.addf %87, %86 : vector<1x128xf32>
    %c17 = arith.constant 17 : index
    %89 = memref.load %arg1[%c17] : memref<25xf32, #tpu.memory_space<smem>>
    %90 = vector.broadcast %89 : f32 to vector<1x128xf32>
    %91 = arith.mulf %90, %1 : vector<1x128xf32>
    %92 = arith.addf %88, %91 : vector<1x128xf32>
    %c18 = arith.constant 18 : index
    %93 = memref.load %arg1[%c18] : memref<25xf32, #tpu.memory_space<smem>>
    %94 = vector.broadcast %93 : f32 to vector<1x128xf32>
    %95 = arith.mulf %94, %2 : vector<1x128xf32>
    %96 = arith.addf %92, %95 : vector<1x128xf32>
    %c19 = arith.constant 19 : index
    %97 = memref.load %arg1[%c19] : memref<25xf32, #tpu.memory_space<smem>>
    %98 = vector.broadcast %97 : f32 to vector<1x128xf32>
    %99 = arith.mulf %98, %3 : vector<1x128xf32>
    %100 = arith.addf %96, %99 : vector<1x128xf32>
    %c4_30 = arith.constant 4 : index
    %c0_31 = arith.constant 0 : index
    %101 = vector.load %arg2[%c4_30, %c0_31] : memref<13x128xf32, #tpu.memory_space<vmem>>, vector<1x128xf32>
    %102 = arith.addf %101, %100 : vector<1x128xf32>
    %c4_32 = arith.constant 4 : index
    %c0_33 = arith.constant 0 : index
    %103 = vector.load %arg5[%c4_32, %c0_33] : memref<13x128xf32, #tpu.memory_space<vmem>>, vector<1x128xf32>
    tpu.vector_store %arg5[%c4_32, %c0_33], %102 {strides = array<i32>} : memref<13x128xf32, #tpu.memory_space<vmem>>, vector<1x128xf32>,
    %c3_34 = arith.constant 3 : index
    %c0_35 = arith.constant 0 : index
    %104 = vector.load %arg3[%c3_34, %c0_35] : memref<4x128xf32, #tpu.memory_space<vmem>>, vector<1x128xf32>
    %105 = arith.mulf %104, %100 : vector<1x128xf32>
    %106 = arith.addf %81, %105 : vector<1x128xf32>
    %c21 = arith.constant 21 : index
    %107 = memref.load %arg1[%c21] : memref<25xf32, #tpu.memory_space<smem>>
    %108 = vector.broadcast %107 : f32 to vector<1x128xf32>
    %109 = arith.mulf %108, %0 : vector<1x128xf32>
    %110 = arith.addf %106, %109 : vector<1x128xf32>
    %c22 = arith.constant 22 : index
    %111 = memref.load %arg1[%c22] : memref<25xf32, #tpu.memory_space<smem>>
    %112 = vector.broadcast %111 : f32 to vector<1x128xf32>
    %113 = arith.mulf %112, %1 : vector<1x128xf32>
    %114 = arith.addf %110, %113 : vector<1x128xf32>
    %c23 = arith.constant 23 : index
    %115 = memref.load %arg1[%c23] : memref<25xf32, #tpu.memory_space<smem>>
    %116 = vector.broadcast %115 : f32 to vector<1x128xf32>
    %117 = arith.mulf %116, %2 : vector<1x128xf32>
    %118 = arith.addf %114, %117 : vector<1x128xf32>
    %c24 = arith.constant 24 : index
    %119 = memref.load %arg1[%c24] : memref<25xf32, #tpu.memory_space<smem>>
    %120 = vector.broadcast %119 : f32 to vector<1x128xf32>
    %121 = arith.mulf %120, %3 : vector<1x128xf32>
    %122 = arith.addf %118, %121 : vector<1x128xf32>
    %c0_36 = arith.constant 0 : index
    %c0_37 = arith.constant 0 : index
    %123 = vector.load %arg2[%c0_36, %c0_37] : memref<13x128xf32, #tpu.memory_space<vmem>>, vector<1x128xf32>
    %124 = arith.addf %123, %122 : vector<1x128xf32>
    %c0_38 = arith.constant 0 : index
    %c0_39 = arith.constant 0 : index
    %125 = vector.load %arg5[%c0_38, %c0_39] : memref<13x128xf32, #tpu.memory_space<vmem>>, vector<1x128xf32>
    tpu.vector_store %arg5[%c0_38, %c0_39], %124 {strides = array<i32>} : memref<13x128xf32, #tpu.memory_space<vmem>>, vector<1x128xf32>,
    %c9_40 = arith.constant 9 : index
    %c0_41 = arith.constant 0 : index
    %126 = vector.load %arg2[%c9_40, %c0_41] : memref<13x128xf32, #tpu.memory_space<vmem>>, vector<4x128xf32>
    %c5_42 = arith.constant 5 : index
    %c0_43 = arith.constant 0 : index
    %127 = vector.load %arg5[%c5_42, %c0_43] : memref<13x128xf32, #tpu.memory_space<vmem>>, vector<4x128xf32>
    tpu.vector_store %arg5[%c5_42, %c0_43], %126 {strides = array<i32>} : memref<13x128xf32, #tpu.memory_space<vmem>>, vector<4x128xf32>,
    %c4_44 = arith.constant 4 : index
    %c0_45 = arith.constant 0 : index
    %128 = vector.load %arg4[%c4_44, %c0_45] : memref<8x128xf32, #tpu.memory_space<vmem>>, vector<4x128xf32>
    %129 = arith.addf %126, %128 : vector<4x128xf32>
    %c9_46 = arith.constant 9 : index
    %c0_47 = arith.constant 0 : index
    %130 = vector.load %arg5[%c9_46, %c0_47] : memref<13x128xf32, #tpu.memory_space<vmem>>, vector<4x128xf32>
    tpu.vector_store %arg5[%c9_46, %c0_47], %129 {strides = array<i32>} : memref<13x128xf32, #tpu.memory_space<vmem>>, vector<4x128xf32>,
    return
  }
  func.func @transform_0(%arg0: i32) -> i32 {
    %c0_i32 = arith.constant 0 : i32
    %c0_i32_0 = arith.constant 0 : i32
    return %c0_i32 : i32
  }
  func.func @transform_1(%arg0: i32) -> (i32, i32) {
    %c0_i32 = arith.constant 0 : i32
    %c0_i32_0 = arith.constant 0 : i32
    return %c0_i32, %arg0 : i32, i32
  }
  func.func @transform_2(%arg0: i32) -> (i32, i32) {
    %c0_i32 = arith.constant 0 : i32
    %c0_i32_0 = arith.constant 0 : i32
    return %c0_i32, %arg0 : i32, i32
  }
  func.func @transform_3(%arg0: i32) -> (i32, i32) {
    %c0_i32 = arith.constant 0 : i32
    %c0_i32_0 = arith.constant 0 : i32
    return %c0_i32, %arg0 : i32, i32
  }
  func.func @transform_4(%arg0: i32) -> (i32, i32) {
    %c0_i32 = arith.constant 0 : i32
    %c0_i32_0 = arith.constant 0 : i32
    return %c0_i32, %arg0 : i32, i32
  }
}

</mosaic_0001>

<bundles_post_ra>
// kernel: tpu_custom_call.1
= control target key start
LH: loop header
LB: loop body
LE: loop exit
PB: predicated region body
PF: predicated region fallthrough
CT: control target
= control target key end

     0   :  { %s1292_s0 = inlined_call_operand.hbm [shape: f32[25], index: 0, kind: input, shape index: {}]   ;;  %s1293_s1 = inlined_call_operand.hbm [shape: f32[13,256], index: 1, kind: input, shape index: {}]   ;;  %s1294_s2 = inlined_call_operand.hbm [shape: f32[4,256], index: 2, kind: input, shape index: {}]   ;;  %s1295_s3 = inlined_call_operand.hbm [shape: f32[8,256], index: 3, kind: input, shape index: {}]   ;;  %s1296_s4 = inlined_call_operand.hbm [shape: f32[13,256], index: 4, kind: output, shape index: {}]  }
   0x1   :  { %1303 = sst [smem:[#allocation16_spill]] %s1292_s0 }
   0x2   :  { %1304 = sst [smem:[#allocation17_spill]] %s1294_s2 }
   0x3   :  { %9 = vsyncpa [#allocation5], 0 }
   0x4   :  { %10 = vsyncpa [#allocation3], 0 }
   0x5   :  { %12 = vsyncpa [#allocation3 + $0x1], 0 }
   0x6   :  { %13 = vsyncpa [#allocation8], 0 }
   0x7   :  { %15 = vsyncpa [#allocation8 + $0x1], 0 }
   0x8   :  { %16 = vsyncpa [#allocation4], 0 }
   0x9   :  { %18 = vsyncpa [#allocation4 + $0x1], 0  ;;  %s902_s15 = smov 0   ;;  %s904_s16 = smov 0  }
   0xa   :  { %s906_s17 = smov 0   ;;  %s908_s18 = smov 0  }
   0xb LB: > { %s923_s19 = sadd.s32 1, %s864_s18   ;;  %s52_s20 = sadd.s32 1, %s860_s17  ;;  %s864_s18 = sphi %s908_s18, %s1329_s18   ;;  %s860_s17 = sphi %s906_s17, %s1328_s17   ;;  %s856_s16 = sphi %s904_s16, %s1327_s16   ;;  %s852_s15 = sphi %s902_s15, %s1326_s15  }
   0xc   : > { %s49_s21 = ssub.s32 %s864_s18, %s923_s19  ;;  %p1297_p0 = scmp.ne.s32.totalorder %s860_s17, %s856_s16 }
   0xd   : > { %p50_p1 = scmp.eq.s32.totalorder %s49_s21, 0  ;;  %p60_p2 = scmp.eq.s32.totalorder %s864_s18, 0 }
   0xe   : > { %p645_p4 = scmp.lt.s32.totalorder %s864_s18, 2  ;;  %s940_s23 = sand.u32 1, %s860_s17  }
   0xf   : > { %s934_s22 = scalar_select %p50_p1, %s860_s17, %s52_s20  }
  0x10   : > { %p61_p5 = por %p60_p2, %p1297_p0  ;;  %s574_s24 = sshll.u32 %s940_s23, 4 }
  0x11   : > { %1305 = sst [smem:[#allocation15_spill]] %s934_s22  ;;  %s196_s25 = sand.u32 1, %s864_s18  }
  0x12   : > { %p944_p6 = pnand %p645_p4, %p61_p5  ;;  %s576_s27 = sshll.u32 %s940_s23, 2 }
  0x13   : > { %s577_s28 = sshll.u32 %s864_s18, 6  ;;  %s1307_s2 = sld [smem:[#allocation17_spill]] }
  0x14   : > { %s1306_s26 = scalar_select %p944_p6, 1, 0 }
  0x15   : > { %s200_s6 = scalar_lea.vmem [#allocation7], %s576_s27  ;;  %s957_s8 = scalar_lea.sflag [#allocation8], %s196_s25 }
  0x16   : > { %s207_s7 = sshll.u32 %s200_s6, 4  ;;  %p963_p8 = pneg %p944_p6  ;;  %s955_s7 = int_to_ptr.vmem [resolvable:$true] %s207_s7 }
  0x19   : > { %s953_s5 = scalar_lea.hbm %s1307_s2, %s577_s28  ;;  %s692_s13 = scalar_lea.hbm %s1307_s2, 128 }
  0x1a   : > { %s687_s9 = scalar_lea.hbm %s953_s5, 64  ;;  %p693_p11 = scmp.lt.u32.totalorder %s953_s5, %s1307_s2 }
  0x1b   : > { %p688_p7 = scmp.ne.s32.totalorder %s953_s5, %s687_s9  ;;  %p694_p12 = scmp.lt.u32.totalorder %s692_s13, %s687_s9 }
  0x1c   : > { %p696_p1 = scmp.lt.u32.totalorder %s687_s9, %s953_s5 }
  0x1d   : > { %p690_p9 = pnand %p963_p8, %p688_p7  ;;  %p695_p13 = por %p694_p12, %p693_p11 }
  0x1f   : > { %p691_p10 = pneg %p690_p9  ;;  %p697_p2 = por %p696_p1, %p695_p13 }
  0x21   : > { %p698_p4 = pnand %p697_p2, %p691_p10 }
  0x23   : > { %701 = shalt.err (!%p698_p4)
}
  0x24   : > { %s702_s21 = scalar_lea.vmem %s955_s7, 64  ;;  %s866_s25 = smov [#allocation7]  }
  0x25   : > { %p703_p5 = scmp.ne.s32.totalorder %s955_s7, %s702_s21  ;;  %s707_s27 = sshll.u32 %s866_s25, 4  ;;  %s708_s27 = int_to_ptr.vmem [resolvable:$false] %s707_s27 }
  0x26   : > { %s709_s28 = scalar_lea.vmem %s708_s27, 128  ;;  %p710_p3 = scmp.lt.s32.totalorder %s955_s7, %s708_s27 }
  0x27   : > { %p705_p7 = pnand %p703_p5, %p963_p8  ;;  %p711_p0 = scmp.lt.s32.totalorder %s709_s28, %s702_s21 }
  0x29   : > { %p706_p9 = pneg %p705_p7  ;;  %p712_p11 = por %p711_p0, %p710_p3 }
  0x2b   : > { %p713_p12 = pnand %p712_p11, %p706_p9 }
  0x2d   : > { %716 = shalt.err (!%p713_p12)
}
  0x2e   : > { %636 = dma.hbm_to_vmem [thread:$0]  (!%p944_p6), %s953_s5, 64, %s955_s7, %s957_s8  }
  0x2f   : > { %s988_s29 = sadd.s32 4294967295, %s864_s18   ;;  %s570_s30 = sadd.s32 4294967294, %s864_s18  }
  0x30   : > { %p65_p0 = scmp.ne.s32.totalorder %s856_s16, %s852_s15  ;;  %p1298_p3 = scmp.eq.s32.totalorder %s988_s29, 0 }
  0x31   : > { %p141_p10 = scmp.eq.s32.totalorder %s988_s29, 1  ;;  %p147_p13 = scmp.eq.s32.totalorder %s570_s30, 1 }
  0x32   : > { %p571_p1 = scmp.ge.s32.totalorder %s864_s18, 1  ;;  %p998_p2 = por %p1298_p3, %p65_p0 }
  0x33   : > { %p1310_p4 = scmp.ne.s32.totalorder %s860_s17, %s856_s16  ;;  %p1009_p7 = por %p147_p13, %p65_p0 }
  0x34   : > { %s1309_s6 = scalar_select %p998_p2, 1, 0 }
  0x35   : > { %p1005_p5 = por %p141_p10, %p1310_p4  ;;  %p154_p9 = scmp.lt.s32.totalorder %s864_s18, 3 }
  0x36   : > { %s1312_s7 = scalar_select %p1009_p7, 1, 0 }
  0x37   : > { %s1311_s5 = scalar_select %p1005_p5, 1, 0 }
  0x38   : > { %p1014_p11 = pnand %p571_p1, %p154_p9  ;;  %s575_s11 = sshll.u32 %s864_s18, 7 }
  0x39   : > { %s1026_s14 = scalar_lea.hbm %s1293_s1, %s575_s11  ;;  %s180_s20 = scalar_lea.vmem [#allocation6], %s574_s24 }
  0x3a   : > { %s1313_s9 = scalar_select %p1014_p11, 1, 0 }
  0x3b   : > { %p626_p12 = pneg %p1014_p11  ;;  %s186_s21 = sshll.u32 %s180_s20, 4  ;;  %s1032_s21 = int_to_ptr.vmem [resolvable:$true] %s186_s21 }
  0x3c   : > { %s1314_s0 = sld [smem:[#allocation16_spill]] }
  0x3d   : > { %p627_p0 = pnand %p626_p12, %p1298_p3 }
  0x3f   : > { %p719_p13 = pneg %p627_p0 }
  0x42   : > { %s717_s30 = scalar_lea.hbm %s1314_s0, 16 }
  0x43   : > { %p718_p10 = scmp.ne.s32.totalorder %s1314_s0, %s717_s30  ;;  %p724_p9 = scmp.lt.u32.totalorder %s717_s30, %s1314_s0 }
  0x45   : > { %p720_p1 = pnand %p719_p13, %p718_p10 }
  0x47   : > { %p721_p4 = pneg %p720_p1 }
  0x49   : > { %p726_p7 = pnand %p724_p9, %p721_p4 }
  0x4b   : > { %729 = shalt.err (!%p726_p7)
}
  0x4c   : > { %s867_s24 = smov [#allocation2]   ;;  %s177_s2 = scalar_lea.sflag [#allocation3], %s940_s23 }
  0x4d   : > { %629 = dma.hbm_to_smem (!%p627_p0), %s1314_s0, 16, %s867_s24, [#allocation5]  }
  0x4e   : > { %s730_s22 = scalar_lea.hbm %s1026_s14, 256  ;;  %s735_s30 = scalar_lea.hbm %s1293_s1, 512 }
  0x4f   : > { %p731_p12 = scmp.ne.s32.totalorder %s1026_s14, %s730_s22  ;;  %p736_p7 = scmp.lt.u32.totalorder %s1026_s14, %s1293_s1 }
  0x50   : > { %p737_p1 = scmp.lt.u32.totalorder %s735_s30, %s730_s22  ;;  %p739_p9 = scmp.lt.u32.totalorder %s730_s22, %s1026_s14 }
  0x51   : > { %p733_p10 = pnand %p731_p12, %p963_p8 }
  0x52   : > { %p738_p4 = por %p737_p1, %p736_p7 }
  0x53   : > { %p734_p13 = pneg %p733_p10 }
  0x54   : > { %p740_p3 = por %p739_p9, %p738_p4 }
  0x56   : > { %p741_p5 = pnand %p740_p3, %p734_p13 }
  0x58   : > { %744 = shalt.err (!%p741_p5)
}
  0x59   : > { %s745_s25 = scalar_lea.vmem %s1032_s21, 256  ;;  %s868_s24 = smov [#allocation6]  }
  0x5a   : > { %p746_p0 = scmp.ne.s32.totalorder %s1032_s21, %s745_s25  ;;  %s750_s20 = sshll.u32 %s868_s24, 4  ;;  %s751_s20 = int_to_ptr.vmem [resolvable:$false] %s750_s20 }
  0x5b   : > { %s752_s27 = scalar_lea.vmem %s751_s20, 512  ;;  %p753_p2 = scmp.lt.s32.totalorder %s1032_s21, %s751_s20 }
  0x5c   : > { %p748_p12 = pnand %p746_p0, %p963_p8  ;;  %p754_p11 = scmp.lt.s32.totalorder %s752_s27, %s745_s25 }
  0x5e   : > { %p749_p10 = pneg %p748_p12  ;;  %p755_p7 = por %p754_p11, %p753_p2 }
  0x60   : > { %p756_p1 = pnand %p755_p7, %p749_p10 }
  0x62   : > { %759 = shalt.err (!%p756_p1)
}
  0x63   : > { %s869_s22 = smov 256   ;;  %s870_s28 = smov 128  }
  0x64   : > { %s871_s30 = smov 8   ;;  %s1076_s25 = scalar_lea.hbm %s1295_s3, %s575_s11 }
  0x65   : > { %633 = dma.hbm_to_vmem [thread:$0]  (!%p944_p6), %s1026_s14, 256, %s1032_s21, %s177_s2, %s869_s22, %s870_s28, %s871_s30  }
  0x66   : > { %s1315_s24 = sshll.u32 %s940_s23, 3  ;;  %s760_s0 = scalar_lea.hbm %s1076_s25, 128 }
  0x67   : > { %s218_s20 = scalar_lea.vmem [#allocation9], %s1315_s24  ;;  %p761_p3 = scmp.ne.s32.totalorder %s1076_s25, %s760_s0 }
  0x68   : > { %s225_s27 = sshll.u32 %s218_s20, 4  ;;  %s765_s2 = scalar_lea.hbm %s1295_s3, 256  ;;  %s226_s27 = int_to_ptr.vmem [resolvable:$true] %s225_s27 }
  0x69   : > { %p763_p2 = pnand %p761_p3, %p963_p8  ;;  %p766_p11 = scmp.lt.u32.totalorder %s1076_s25, %s1295_s3 }
  0x6a   : > { %p767_p13 = scmp.lt.u32.totalorder %s765_s2, %s760_s0  ;;  %p769_p9 = scmp.lt.u32.totalorder %s760_s0, %s1076_s25 }
  0x6b   : > { %p764_p5 = pneg %p763_p2 }
  0x6c   : > { %p768_p4 = por %p767_p13, %p766_p11 }
  0x6e   : > { %p770_p0 = por %p769_p9, %p768_p4 }
  0x70   : > { %p771_p12 = pnand %p770_p0, %p764_p5 }
  0x72   : > { %774 = shalt.err (!%p771_p12)
}
  0x73   : > { %s775_s23 = scalar_lea.vmem %s226_s27, 128  ;;  %s872_s28 = smov [#allocation9]  }
  0x74   : > { %p776_p10 = scmp.ne.s32.totalorder %s226_s27, %s775_s23  ;;  %s780_s30 = sshll.u32 %s872_s28, 4  ;;  %s781_s30 = int_to_ptr.vmem [resolvable:$false] %s780_s30 }
  0x75   : > { %s782_s12 = scalar_lea.vmem %s781_s30, 256  ;;  %p783_p3 = scmp.lt.s32.totalorder %s226_s27, %s781_s30 }
  0x76   : > { %p778_p7 = pnand %p776_p10, %p963_p8  ;;  %p784_p2 = scmp.lt.s32.totalorder %s782_s12, %s775_s23 }
  0x78   : > { %p779_p1 = pneg %p778_p7  ;;  %p785_p6 = por %p784_p2, %p783_p3 }
  0x7a   : > { %p786_p11 = pnand %p785_p6, %p779_p1 }
  0x7c   : > { %789 = shalt.err (!%p786_p11)
}
  0x7d   : > { %p1316_p13 = scmp.ne.s32.totalorder %s1306_s26, 0  ;;  %p1317_p5 = scmp.ne.s32.totalorder %s1313_s9, 0 }
  0x7e   : > { %p1318_p8 = scmp.eq.s32.totalorder (!%p1317_p5), %s988_s29, 0 }
  0x7f   : > { %639 = dma.hbm_to_vmem [thread:$0]  (!%p1316_p13), %s1076_s25, 128, %s226_s27, %s957_s8  }
  0x80   : > { %234 = sbr.rel (%p1317_p5) target bundleno = 203 (0xcb), region = 36 }
  0x87   : > { %835 = dma.done.wait (%p1318_p8), [#allocation5], 16   ;;  %p1319_p4 = pmov %p1318_p8 }
  0x88   : > { %s1105_s0 = sand.u32 1, %s856_s16   ;;  %p1320_p6 = scmp.ne.s32.totalorder %s1309_s6, 0 }
  0x89   : > { %837 = vsyncadd (%p1319_p4), [#allocation5], 4294967280  ;;  %s582_s26 = sshll.u32 %s1105_s0, 4  ;;  %s241_s10 = scalar_lea.sflag [#allocation3], %s1105_s0 }
  0x8a   : > { %s1111_s8 = scalar_lea.vmem [#allocation6], %s582_s26 }
  0x8b   : > { %839 = dma.done.wait (%p1320_p6), %s241_s10, 256  }
  0x8c   : > { %841 = vsyncadd (%p1320_p6), %s241_s10, 4294967040  ;;  %s249_s9 = sand.u32 1, %s988_s29   ;;  %s583_s13 = sshll.u32 %s1105_s0, 2 }
  0x8d   : > { %s250_s25 = scalar_lea.sflag [#allocation8], %s249_s9  ;;  %s1119_s24 = scalar_lea.vmem [#allocation7], %s583_s13 }
  0x8e   : > { %843 = dma.done.wait (%p1320_p6), %s250_s25, 192  }
  0x8f   : > { %845 = vsyncadd (%p1320_p6), %s250_s25, 4294967104  ;;  %s584_s20 = sshll.u32 %s1105_s0, 3 }
  0x90   : > { %s1126_s27 = scalar_lea.vmem [#allocation9], %s584_s20 }
  0x91   : > { %267 = sfence }
  0x92   : > { %s1128_s14 = sld [smem:[#allocation2 + $0x14]]  ;;  %s304_s21 = sld [smem:[#allocation2]]  ;;  %v1135_v0 = vld [vmem:[%s1126_s27] sm:$0x1]  ;;  %v1142_v1 = vld [vmem:[%s1126_s27 + $0x1] sm:$0x1] }
  0x93   : > { %s587_s2 = sld [smem:[#allocation2 + $0x4]]  ;;  %s588_s22 = sld [smem:[#allocation2 + $0x5]]  ;;  %v1148_v2 = vld [vmem:[%s1126_s27 + $0x2] sm:$0x1]  ;;  %v1153_v4 = vld [vmem:[%s1126_s27 + $0x3] sm:$0x1] }
  0x94   : > { %s589_s11 = sld [smem:[#allocation2 + $0x6]]  ;;  %s1130_s23 = sld [smem:[#allocation2 + $0x7]]  ;;  %v424_v11 = vld [vmem:[%s1111_s8 + $0x9] sm:$0xf]  ;;  %v323_v26 = vld [vmem:[%s1111_s8 + $0x1] sm:$0x1] }
  0x95   : > { %s1132_s6 = sld [smem:[#allocation2 + $0x1]]  ;;  %s1137_s28 = sld [smem:[#allocation2 + $0x8]]  ;;  %v426_v14 = vld [vmem:[%s1126_s27 + $0x4] sm:$0xf]  ;;  %v326_v30 = vld [vmem:[%s1119_s24] sm:$0x1] }
  0x96   : > { %s1139_s30 = sld [smem:[#allocation2 + $0x9]]  ;;  %s1145_s10 = sld [smem:[#allocation2 + $0xa]]  ;;  %v427_v18 = vadd.f32 %v426_v14, %v424_v11  ;;  %v349_v47 = vld [vmem:[%s1111_s8 + $0x2] sm:$0x1]  ;;  %v352_v48 = vld [vmem:[%s1119_s24 + $0x1] sm:$0x1] }
  0x97   : > { %s1150_s13 = sld [smem:[#allocation2 + $0xb]]  ;;  %s1156_s25 = sld [smem:[#allocation2 + $0x2]]  ;;  %v402_v14 = vld [vmem:[%s1119_s24 + $0x3] sm:$0x1] }
  0x98   : > { %s305_s9 = smul.f32 0.003968254, %s304_s21  ;;  %s1158_s20 = sld [smem:[#allocation2 + $0xc]] }
  0x99   : > { %v307_v3 = vstv %s587_s2  ;;  %v312_v6 = vstv %s588_s22  ;;  %s1162_s21 = sld [smem:[#allocation2 + $0xd]]  ;;  %s1164_s2 = sld [smem:[#allocation2 + $0xe]] }
  0x9a   : > { %v308_v5 = vmul.f32 %v307_v3, %v1135_v0  ;;  %v316_v7 = vstv %s589_s11  ;;  %v309_v8 = vstv %s305_s9  ;;  %v313_v9 = vmul.f32 %v312_v6, %v1142_v1  ;;  %s1169_s11 = sld [smem:[#allocation2 + $0xf]]  ;;  %s1173_s12 = scalar_lea.vmem [#allocation10], %s582_s26  ;;  %v374_v3 = vld [vmem:[%s1111_s8 + $0x3] sm:$0x1] }
  0x9b   : > { %v320_v10 = vstv %s1130_s23  ;;  %v317_v13 = vmul.f32 %v316_v7, %v1148_v2  ;;  %s331_s22 = smul.f32 0.003968254, %s1132_s6  ;;  %425 = vst [vmem:[%s1173_s12 + $0x5] sm:$0xf] %v424_v11  ;;  %v333_v16 = vstv %s1137_s28  ;;  %s1180_s23 = sld [smem:[#allocation2 + $0x3]] }
  0x9c   : > { %v310_v12 = vadd.f32 %v309_v8, %v308_v5  ;;  %v321_v15 = vmul.f32 %v320_v10, %v1153_v4  ;;  %v338_v17 = vstv %s1139_s30  ;;  %s1182_s6 = sld [smem:[#allocation2 + $0x10]]  ;;  %v334_v20 = vmul.f32 %v333_v16, %v1135_v0  ;;  %s1186_s26 = sld [smem:[#allocation2 + $0x11]]  ;;  %428 = vst [vmem:[%s1173_s12 + $0x9] sm:$0xf] %v427_v18  ;;  %v377_v5 = vld [vmem:[%s1119_s24 + $0x2] sm:$0x1] }
  0x9d   : > { %v335_v21 = vstv %s331_s22  ;;  %v339_v22 = vmul.f32 %v338_v17, %v1142_v1  ;;  %v342_v23 = vstv %s1145_s10  ;;  %v346_v24 = vstv %s1150_s13  ;;  %s1190_s27 = sld [smem:[#allocation2 + $0x12]]  ;;  %s1192_s28 = sld [smem:[#allocation2 + $0x13]] }
  0x9e   : > { %v314_v19 = vadd.f32 %v313_v9, %v310_v12  ;;  %s1321_s30 = smul.f32 0.003968254, %s1128_s14  ;;  %v336_v28 = vadd.f32 %v335_v21, %v334_v20  ;;  %v343_v29 = vmul.f32 %v342_v23, %v1148_v2  ;;  %v347_v31 = vmul.f32 %v346_v24, %v1153_v4  ;;  %s1211_s10 = sld [smem:[#allocation2 + $0x15]] }
  0x9f   : > { %s356_s9 = smul.f32 0.003968254, %s1156_s25  ;;  %v358_v32 = vstv %s1158_s20  ;;  %v363_v33 = vstv %s1162_s21  ;;  %v367_v34 = vstv %s1164_s2  ;;  %s1220_s13 = sld [smem:[#allocation2 + $0x16]] }
  0xa0   : > { %v318_v25 = vadd.f32 %v317_v13, %v314_v19  ;;  %v328_v27 = vstv %s1321_s30  ;;  %v340_v36 = vadd.f32 %v339_v22, %v336_v28  ;;  %v359_v37 = vmul.f32 %v358_v32, %v1135_v0  ;;  %s608_s25 = sld [smem:[#allocation2 + $0x17]]  ;;  %s609_s20 = sld [smem:[#allocation2 + $0x18]]  ;;  %v399_v13 = vld [vmem:[%s1111_s8 + $0x4] sm:$0x1] }
  0xa1   : > { %v360_v38 = vstv %s356_s9  ;;  %v364_v39 = vmul.f32 %v363_v33, %v1142_v1  ;;  %v368_v40 = vmul.f32 %v367_v34, %v1148_v2  ;;  %v371_v41 = vstv %s1169_s11  ;;  %s381_s14 = smul.f32 0.003968254, %s1180_s23  ;;  %s442_s24 = sshll.u32 %s1173_s12, 4  ;;  %s1242_s24 = int_to_ptr.vmem [resolvable:$true] %s442_s24 }
  0xa2   : > { %v322_v35 = vadd.f32 %v321_v15, %v318_v25  ;;  %v383_v42 = vstv %s1182_s6  ;;  %v344_v45 = vadd.f32 %v343_v29, %v340_v36  ;;  %v361_v46 = vadd.f32 %v360_v38, %v359_v37  ;;  %s611_s21 = sshll.u32 %s988_s29, 7  ;;  %s430_s23 = scalar_lea.sflag [#allocation4], %s1105_s0 }
  0xa3   : > { %v372_v49 = vmul.f32 %v371_v41, %v1153_v4  ;;  %v384_v50 = vmul.f32 %v383_v42, %v1135_v0  ;;  %v385_v51 = vstv %s381_s14  ;;  %v388_v52 = vstv %s1186_s26  ;;  %s1247_s11 = scalar_lea.hbm %s1296_s4, %s611_s21  ;;  %s790_s6 = scalar_lea.vmem %s1242_s24, 256 }
  0xa4   : > { %v324_v43 = vadd.f32 %v323_v26, %v322_v35  ;;  %v327_v44 = vmul.f32 %v326_v30, %v322_v35  ;;  %v348_v54 = vadd.f32 %v347_v31, %v344_v45  ;;  %v365_v55 = vadd.f32 %v364_v39, %v361_v46  ;;  %v421_v31 = vld [vmem:[%s1111_s8] sm:$0x1]  ;;  %p791_p9 = scmp.ne.s32.totalorder %s1242_s24, %s790_s6  ;;  %p1322_p0 = scmp.ne.s32.totalorder %s1311_s5, 0 }
  0xa5   : > { %v389_v56 = vmul.f32 %v388_v52, %v1142_v1  ;;  %v386_v57 = vadd.f32 %v385_v51, %v384_v50  ;;  %v392_v58 = vstv %s1190_s27  ;;  %v396_v59 = vstv %s1192_s28  ;;  %s873_s29 = smov [#allocation10]  }
  0xa6   : > { %325 = vst [vmem:[%s1173_s12 + $0x1] sm:$0x1] %v324_v43  ;;  %v329_v53 = vadd.f32 %v328_v27, %v327_v44  ;;  %v350_v60 = vadd.f32 %v349_v47, %v348_v54  ;;  %v353_v61 = vmul.f32 %v352_v48, %v348_v54  ;;  %v369_v62 = vadd.f32 %v368_v40, %v365_v55  ;;  %p792_p12 = pnand %p791_p9, %p1322_p0  ;;  %s794_s8 = sshll.u32 %s873_s29, 4  ;;  %s795_s8 = int_to_ptr.vmem [resolvable:$false] %s794_s8 }
  0xa7   : > { %v393_v63 = vmul.f32 %v392_v58, %v1148_v2  ;;  %v390_v6 = vadd.f32 %v389_v56, %v386_v57  ;;  %v397_v7 = vmul.f32 %v396_v59, %v1153_v4  ;;  %v406_v15 = vstv %s1211_s10  ;;  %s796_s26 = scalar_lea.vmem %s795_s8, 512  ;;  %p797_p7 = scmp.lt.s32.totalorder %s1242_s24, %s795_s8 }
  0xa8   : > { %351 = vst [vmem:[%s1173_s12 + $0x2] sm:$0x1] %v350_v60  ;;  %v354_v8 = vadd.f32 %v353_v61, %v329_v53  ;;  %v373_v9 = vadd.f32 %v372_v49, %v369_v62  ;;  %v410_v18 = vstv %s1220_s13  ;;  %v407_v21 = vmul.f32 %v406_v15, %v1135_v0  ;;  %p793_p10 = pneg %p792_p12  ;;  %p798_p1 = scmp.lt.s32.totalorder %s796_s26, %s790_s6 }
  0xa9   : > { %v394_v10 = vadd.f32 %v393_v63, %v390_v6  ;;  %v414_v22 = vstv %s608_s25  ;;  %v411_v24 = vmul.f32 %v410_v18, %v1142_v1  ;;  %v418_v25 = vstv %s609_s20 }
  0xaa   : > { %v375_v11 = vadd.f32 %v374_v3, %v373_v9  ;;  %v378_v12 = vmul.f32 %v377_v5, %v373_v9  ;;  %v415_v27 = vmul.f32 %v414_v22, %v1148_v2  ;;  %v419_v29 = vmul.f32 %v418_v25, %v1153_v4  ;;  %p799_p3 = por %p798_p1, %p797_p7 }
  0xab   : > { %v398_v16 = vadd.f32 %v397_v7, %v394_v10 }
  0xac   : > { %376 = vst [vmem:[%s1173_s12 + $0x3] sm:$0x1] %v375_v11  ;;  %v379_v17 = vadd.f32 %v378_v12, %v354_v8  ;;  %p800_p2 = pnand %p799_p3, %p793_p10 }
  0xad   : > { %v400_v19 = vadd.f32 %v399_v13, %v398_v16  ;;  %v403_v20 = vmul.f32 %v402_v14, %v398_v16 }
  0xaf   : > { %401 = vst [vmem:[%s1173_s12 + $0x4] sm:$0x1] %v400_v19  ;;  %v404_v23 = vadd.f32 %v403_v20, %v379_v17 }
  0xb1   : > { %v408_v26 = vadd.f32 %v407_v21, %v404_v23 }
  0xb3   : > { %v412_v28 = vadd.f32 %v411_v24, %v408_v26 }
  0xb5   : > { %v416_v30 = vadd.f32 %v415_v27, %v412_v28 }
  0xb7   : > { %v420_v0 = vadd.f32 %v419_v29, %v416_v30 }
  0xb9   : > { %v422_v1 = vadd.f32 %v421_v31, %v420_v0 }
  0xbb   : > { %423 = vst [vmem:[%s1173_s12] sm:$0x1] %v422_v1 }
  0xbc   : > { %803 = shalt.err (!%p800_p2)
}
  0xbd   : > { %s804_s12 = scalar_lea.hbm %s1247_s11, 256  ;;  %s808_s30 = scalar_lea.hbm %s1296_s4, 512 }
  0xbe   : > { %p805_p11 = scmp.ne.s32.totalorder %s1247_s11, %s804_s12  ;;  %p809_p8 = scmp.lt.u32.totalorder %s1247_s11, %s1296_s4 }
  0xbf   : > { %p810_p4 = scmp.lt.u32.totalorder %s808_s30, %s804_s12  ;;  %p812_p9 = scmp.lt.u32.totalorder %s804_s12, %s1247_s11 }
  0xc0   : > { %p806_p13 = pnand %p805_p11, %p1322_p0 }
  0xc1   : > { %p811_p6 = por %p810_p4, %p809_p8 }
  0xc2   : > { %p807_p5 = pneg %p806_p13 }
  0xc3   : > { %p813_p12 = por %p812_p9, %p811_p6 }
  0xc5   : > { %p814_p10 = pnand %p813_p12, %p807_p5 }
  0xc7   : > { %817 = shalt.err (!%p814_p10)
}
  0xc8   : > { %s874_s10 = smov 128   ;;  %s875_s13 = smov 256  }
  0xc9   : > { %s876_s25 = smov 8  }
  0xca   : > { %624 = dma.vmem_to_hbm [thread:$0]  (%p1322_p0), %s1242_s24, 256, %s1247_s11, %s430_s23, %s874_s10, %s875_s13, %s876_s25  }
  0xcb PF: > { %s457_s20 = sand.u32 1, %s852_s15   ;;  %p1323_p7 = scmp.ne.s32.totalorder %s1312_s7, 0 }
  0xcc   : > { %p1324_p1 = scmp.ge.s32.totalorder %s864_s18, 2  ;;  %s458_s21 = scalar_lea.sflag [#allocation4], %s457_s20 }
  0xce   : > { %p641_p3 = pnand %p1324_p1, %p1323_p7 }
  0xd0   : > { %847 = dma.done.wait (!%p641_p3), %s458_s21, 256  }
  0xd1   : > { %849 = vsyncadd (!%p641_p3), %s458_s21, 4294967040  ;;  %s1325_s2 = sld [smem:[#allocation15_spill]]  ;;  %p21_p2 = scmp.ge.s32.totalorder %s923_s19, 4  }
  0xd2   : > { %s1326_s15 = smov %s856_s16  ;;  %s1327_s16 = smov %s860_s17 }
  0xd3   : > { %s1329_s18 = smov %s923_s19  ;;  %23 = sbr.rel (!%p21_p2) target bundleno = 11 (0xb), region = 110 }
  0xd7   : > { %s1328_s17 = smov %s1325_s2 }
  0xda   :  { %463 = vsyncpa [#allocation3], 1 }
  0xdb   :  { %465 = vsyncpa [#allocation3 + $0x1], 1 }
  0xdc   :  { %466 = vsyncpa [#allocation8], 1 }
  0xdd   :  { %468 = vsyncpa [#allocation8 + $0x1], 1 }
  0xde   :  { %469 = vsyncpa [#allocation4], 1 }
  0xdf   :  { %471 = vsyncpa [#allocation4 + $0x1], 1 }
  0xe0   :  { %472 = vsyncpa [#allocation5], 1 }
  0xe1   :  { %474 = vsyncpa [#allocation5 + $0x1], 1 }

</bundles_post_ra>
